<compile_context>
chip_gen: v5e
topology: v5e:2x2
jax: 0.10.0
libtpu: 0.0.40
codegen_flags: <defaults>
</compile_context>

<pallas_src>
import jax
import jax.numpy as jnp
from jax.experimental import pallas as pl
from jax.experimental.pallas import tpu as pltpu


def _round_up(x, m):
    return ((x + m - 1) // m) * m


def _device_kind():
    try:
        return jax.devices()[0].device_kind.lower()
    except Exception:
        return ""


def _vmem_capacity_bytes():
    try:
        return int(pltpu.get_tpu_info().vmem_capacity_bytes)
    except Exception:
        pass
    kind = _device_kind()
    if "v7" in kind:
        return 64 * 1024 * 1024          # v7x: 64 MiB per TensorCore
    if any(g in kind for g in ("v4", "v5", "v6")):
        return 128 * 1024 * 1024         # v4/v5e/v6e: 128 MiB
    return 64 * 1024 * 1024              # unknown generation: stay conservative


def _min_grid_blocks(n):
    """Minimum number of grid blocks so megacore parts keep both TCs busy."""
    if "v7" in _device_kind() and n >= 32:
        return 4
    if n >= 16:
        return 2
    return 1


def _choose_tiling(n, c, stream_itemsize_sum, extra_row_bytes=0):
    """Pick the batch tile + scoped-VMEM limit from the device VMEM capacity.

    stream_itemsize_sum: summed element sizes of all (tile, C) arrays streamed
    from HBM per grid step (e.g. 8 for f32 logits + f32 soft target).
    extra_row_bytes: per-row VMEM bytes for extra lane-padded side inputs
    (e.g. the (tile, 1) int32 label block, double-buffered).
    """
    c_pad = _round_up(c, 128)            # lane padding of the class dim
    vmem_cap = _vmem_capacity_bytes()
    vmem_limit = min(max((vmem_cap * 3) // 4, 32 * 1024 * 1024), vmem_cap)
    block_budget = (vmem_limit * 3) // 4  # headroom for compiler scratch/outputs

    # Per-batch-row VMEM footprint:
    #   streamed (tile, C) inputs x 2 pipeline buffers
    # + ~3 f32 in-kernel temporaries over the lane-padded tile
    # + lane-padded side inputs (labels).
    per_row = 2 * c_pad * stream_itemsize_sum + 3 * c_pad * 4 + extra_row_bytes

    if per_row * 8 > block_budget:
        # TODO(synk): add a class-axis grid dimension with an online
        # (flash-style) lse for vocab-scale C that does not fit VMEM.
        raise NotImplementedError(
            f"num_classes={c} needs class-axis tiling: a single (8, {c}) "
            f"block exceeds the scoped VMEM budget ({block_budget} bytes).")

    tile_n = block_budget // per_row
    # Keep >=4 blocks on v7x (2 TCs) / >=2 elsewhere so the pipeline and both
    # cores stay busy; rounding down to a multiple of 8 only adds blocks.
    cap = max(8, -(-n // _min_grid_blocks(n)))
    tile_n = min(int(tile_n), cap, _round_up(n, 8))
    tile_n = max(8, (tile_n // 8) * 8)
    return tile_n, int(vmem_limit)


# ----------------------------------------------------------------------------
# Kernels
# ----------------------------------------------------------------------------

def _soft_ce_kernel(x_ref, t_ref, out_ref):
    """Per-block partial of sum_b sum_c(-t * log_softmax(x)), soft targets."""
    x = x_ref[...].astype(jnp.float32)    # (tile_n, C)
    t = t_ref[...].astype(jnp.float32)    # (tile_n, C)

    m = jnp.max(x, axis=-1, keepdims=True)
    xm = x - m                            # reused by both reductions below
    lse = jnp.log(jnp.sum(jnp.exp(xm), axis=-1, keepdims=True))

    sum_t = jnp.sum(t, axis=-1, keepdims=True)
    sum_txm = jnp.sum(t * xm, axis=-1, keepdims=True)
    # sum_c(-t * (xm - lse)) == sum_c(t) * lse - sum_c(t * xm)
    row_loss = sum_t * lse - sum_txm      # (tile_n, 1); padded rows -> 0

    out_ref[...] = jnp.zeros(out_ref.shape, jnp.float32) + jnp.sum(row_loss)


def _hard_ce_kernel(x_ref, lbl_ref, out_ref):
    """Per-block partial for integer labels; label < 0 marks a padded row."""
    x = x_ref[...].astype(jnp.float32)    # (tile_n, C)
    lbl = lbl_ref[...]                    # (tile_n, 1) int32
    c = x.shape[-1]

    m = jnp.max(x, axis=-1, keepdims=True)
    xm = x - m
    lse = jnp.log(jnp.sum(jnp.exp(xm), axis=-1, keepdims=True))

    classes = jax.lax.broadcasted_iota(jnp.int32, x.shape, 1)
    gathered = jnp.sum(jnp.where(classes == lbl, xm, 0.0), axis=-1,
                       keepdims=True)                       # xm[label]
    valid = jnp.logical_and(lbl >= 0, lbl < c).astype(jnp.float32)  # (tile_n,1)
    row_loss = valid * lse - gathered

    out_ref[...] = jnp.zeros(out_ref.shape, jnp.float32) + jnp.sum(row_loss)


def _cutmix_pair_kernel(x_ref, la_ref, lb_ref, lse_ref, xa_ref, xb_ref):
    """CutMix-structured path: stream logits + two label vectors only.

    Emits three per-block partials; lam is applied outside the kernel.
    """
    x = x_ref[...].astype(jnp.float32)    # (tile_n, C)
    la = la_ref[...]                      # (tile_n, 1) int32 (< 0 == padding)
    lb = lb_ref[...]                      # (tile_n, 1) int32

    m = jnp.max(x, axis=-1, keepdims=True)
    xm = x - m
    lse = jnp.log(jnp.sum(jnp.exp(xm), axis=-1, keepdims=True))

    classes = jax.lax.broadcasted_iota(jnp.int32, x.shape, 1)
    xa = jnp.sum(jnp.where(classes == la, xm, 0.0), axis=-1, keepdims=True)
    xb = jnp.sum(jnp.where(classes == lb, xm, 0.0), axis=-1, keepdims=True)
    valid = (la >= 0).astype(jnp.float32)

    lse_ref[...] = jnp.zeros(lse_ref.shape, jnp.float32) + jnp.sum(valid * lse)
    xa_ref[...] = jnp.zeros(xa_ref.shape, jnp.float32) + jnp.sum(xa)
    xb_ref[...] = jnp.zeros(xb_ref.shape, jnp.float32) + jnp.sum(xb)


# ----------------------------------------------------------------------------
# Wrappers
# ----------------------------------------------------------------------------

_LBL_ROW_BYTES = 2 * 128 * 4  # (tile,1) i32 block, lane-padded, double-buffered


def cutmix_cross_entropy_loss(logits, target, size_average=True, tile_n=None):
    """Pallas implementation of CutMixCrossEntropyLoss.forward.

    logits: (N, C) float array.
    target: (N,) int labels OR (N, C) soft targets.
    Returns a float32 scalar (mean over N if size_average else sum).
    """
    n, c = logits.shape
    hard = target.ndim == 1

    itemsize_x = jnp.dtype(logits.dtype).itemsize
    if hard:
        stream_sum, extra_row = itemsize_x, _LBL_ROW_BYTES
    else:
        stream_sum = itemsize_x + jnp.dtype(target.dtype).itemsize
        extra_row = 0

    auto_tile, vmem_limit = _choose_tiling(n, c, stream_sum, extra_row)
    if tile_n is None:
        tile_n = auto_tile
    tile_n = max(8, (min(int(tile_n), _round_up(n, 8)) // 8) * 8)

    n_pad = _round_up(n, tile_n)
    num_blocks = n_pad // tile_n

    logits_p = logits
    if n_pad != n:
        logits_p = jnp.pad(logits, ((0, n_pad - n), (0, 0)))

    out_specs = pl.BlockSpec((1, 8, 128), lambda i: (i, 0, 0))
    out_shape = jax.ShapeDtypeStruct((num_blocks, 8, 128), jnp.float32)
    compiler_params = pltpu.CompilerParams(
        dimension_semantics=("parallel",),
        vmem_limit_bytes=vmem_limit,
    )

    if hard:
        lbl = target.astype(jnp.int32).reshape(n, 1)
        if n_pad != n:
            lbl = jnp.pad(lbl, ((0, n_pad - n), (0, 0)), constant_values=-1)
        partials = pl.pallas_call(
            _hard_ce_kernel,
            out_shape=out_shape,
            grid_spec=pltpu.PrefetchScalarGridSpec(
                num_scalar_prefetch=0,
                grid=(num_blocks,),
                in_specs=[
                    pl.BlockSpec((tile_n, c), lambda i: (i, 0)),
                    pl.BlockSpec((tile_n, 1), lambda i: (i, 0)),
                ],
                out_specs=out_specs,
            ),
            compiler_params=compiler_params,
        )(logits_p, lbl)
    else:
        tgt = target
        if n_pad != n:
            tgt = jnp.pad(target, ((0, n_pad - n), (0, 0)))
        partials = pl.pallas_call(
            _soft_ce_kernel,
            out_shape=out_shape,
            grid_spec=pltpu.PrefetchScalarGridSpec(
                num_scalar_prefetch=0,
                grid=(num_blocks,),
                in_specs=[
                    pl.BlockSpec((tile_n, c), lambda i: (i, 0)),
                    pl.BlockSpec((tile_n, c), lambda i: (i, 0)),
                ],
                out_specs=out_specs,
            ),
            compiler_params=compiler_params,
        )(logits_p, tgt)

    total = jnp.sum(partials[:, 0, 0])
    if size_average:
        return total / jnp.float32(n)
    return total


def cutmix_cross_entropy_loss_pair(logits, label_a, label_b, lam,
                                   size_average=True, tile_n=None):
    """CutMix-structured loss: target = lam*onehot(a) + (1-lam)*onehot(b).

    Streams only the logits plus two (N,) int vectors (no dense soft target),
    halving HBM traffic vs. the generic soft-target path.
    """
    n, c = logits.shape
    itemsize_x = jnp.dtype(logits.dtype).itemsize
    auto_tile, vmem_limit = _choose_tiling(n, c, itemsize_x,
                                           extra_row_bytes=2 * _LBL_ROW_BYTES)
    if tile_n is None:
        tile_n = auto_tile
    tile_n = max(8, (min(int(tile_n), _round_up(n, 8)) // 8) * 8)

    n_pad = _round_up(n, tile_n)
    num_blocks = n_pad // tile_n

    logits_p = logits
    la = label_a.astype(jnp.int32).reshape(n, 1)
    lb = label_b.astype(jnp.int32).reshape(n, 1)
    if n_pad != n:
        logits_p = jnp.pad(logits, ((0, n_pad - n), (0, 0)))
        la = jnp.pad(la, ((0, n_pad - n), (0, 0)), constant_values=-1)
        lb = jnp.pad(lb, ((0, n_pad - n), (0, 0)), constant_values=-1)

    out_block = pl.BlockSpec((1, 8, 128), lambda i: (i, 0, 0))
    out_sds = jax.ShapeDtypeStruct((num_blocks, 8, 128), jnp.float32)

    lse_p, xa_p, xb_p = pl.pallas_call(
        _cutmix_pair_kernel,
        out_shape=(out_sds, out_sds, out_sds),
        grid_spec=pltpu.PrefetchScalarGridSpec(
            num_scalar_prefetch=0,
            grid=(num_blocks,),
            in_specs=[
                pl.BlockSpec((tile_n, c), lambda i: (i, 0)),
                pl.BlockSpec((tile_n, 1), lambda i: (i, 0)),
                pl.BlockSpec((tile_n, 1), lambda i: (i, 0)),
            ],
            out_specs=[out_block, out_block, out_block],
        ),
        compiler_params=pltpu.CompilerParams(
            dimension_semantics=("parallel",),
            vmem_limit_bytes=vmem_limit,
        ),
    )(logits_p, la, lb)

    lam = jnp.asarray(lam, jnp.float32)
    total = (jnp.sum(lse_p[:, 0, 0])
             - lam * jnp.sum(xa_p[:, 0, 0])
             - (1.0 - lam) * jnp.sum(xb_p[:, 0, 0]))
    if size_average:
        return total / jnp.float32(n)
    return total


# ----------------------------------------------------------------------------
# Reference + self-test
# ----------------------------------------------------------------------------

def _reference_loss(logits, target, size_average=True):
    if target.ndim == 1:
        target = jax.nn.one_hot(target, logits.shape[-1], dtype=jnp.float32)
    logp = jax.nn.log_softmax(logits.astype(jnp.float32), axis=1)
    per_row = jnp.sum(-target * logp, axis=1)
    return jnp.mean(per_row) if size_average else jnp.sum(per_row)


if __name__ == "__main__":
    key = jax.random.PRNGKey(0)
    k1, k2, k3, k4, k5 = jax.random.split(key, 5)

    ok = True

    # Case 1: small tile-aligned batch (soft + hard targets).
    N, C = 16, 32
    logits = jax.random.normal(k1, (N, C), dtype=jnp.float32) * 2.0
    raw = jax.random.uniform(k2, (N, C), dtype=jnp.float32)
    soft_target = raw / jnp.sum(raw, axis=1, keepdims=True)
    hard_target = jax.random.randint(k3, (N,), 0, C, dtype=jnp.int32)

    for tgt in (soft_target, hard_target):
        for size_average in (True, False):
            got = jax.block_until_ready(
                cutmix_cross_entropy_loss(logits, tgt, size_average))
            want = _reference_loss(logits, tgt, size_average)
            ok &= bool(jnp.allclose(got, want, rtol=1e-5, atol=1e-5))

    # Case 2: ragged batch (exercises zero-padding / -1 label masking).
    N2, C2 = 13, 40
    logits2 = jax.random.normal(k4, (N2, C2), dtype=jnp.float32)
    raw2 = jax.random.uniform(k2, (N2, C2), dtype=jnp.float32)
    soft2 = raw2 / jnp.sum(raw2, axis=1, keepdims=True)
    hard2 = jax.random.randint(k5, (N2,), 0, C2, dtype=jnp.int32)

    for tgt in (soft2, hard2):
        for size_average in (True, False):
            got = jax.block_until_ready(
                cutmix_cross_entropy_loss(logits2, tgt, size_average))
            want = _reference_loss(logits2, tgt, size_average)
            ok &= bool(jnp.allclose(got, want, rtol=1e-5, atol=1e-5))

    # Case 3: structured CutMix pair path (labels + lam, no dense soft target).
    N3, C3 = 12, 24
    logits3 = jax.random.normal(k1, (N3, C3), dtype=jnp.float32)
    lab_a = jax.random.randint(k2, (N3,), 0, C3, dtype=jnp.int32)
    lab_b = jax.random.randint(k3, (N3,), 0, C3, dtype=jnp.int32)
    lam = 0.3
    mixed = (lam * jax.nn.one_hot(lab_a, C3, dtype=jnp.float32)
             + (1.0 - lam) * jax.nn.one_hot(lab_b, C3, dtype=jnp.float32))
    for size_average in (True, False):
        got = jax.block_until_ready(
            cutmix_cross_entropy_loss_pair(logits3, lab_a, lab_b, lam,
                                           size_average))
        want = _reference_loss(logits3, mixed, size_average)
        ok &= bool(jnp.allclose(got, want, rtol=1e-5, atol=1e-5))

    print("KERNEL_OK" if ok else "KERNEL_MISMATCH")
</pallas_src>

<mosaic_0001>
module attributes {stable_mosaic.version = 11 : i64} {
  func.func @_soft_ce_kernel(%arg0: i32, %arg1: memref<8x32xf32, #tpu.memory_space<vmem>>, %arg2: memref<8x32xf32, #tpu.memory_space<vmem>>, %arg3: memref<1x8x128xf32, #tpu.memory_space<vmem>>) attributes {dimension_semantics = [#tpu.dimension_semantics<parallel>], iteration_bounds = array<i64: 2>, scalar_prefetch = 0 : i64, scratch_operands = 0 : i64, tpu.core_type = #tpu.core_type<tc>, window_params = [{transform_indices = @transform_0, window_bounds = array<i64: 8, 32>}, {transform_indices = @transform_1, window_bounds = array<i64: 8, 32>}, {transform_indices = @transform_2, window_bounds = array<i64: 1, 8, 128>}]} {
    %c0 = arith.constant 0 : index
    %c0_0 = arith.constant 0 : index
    %0 = vector.load %arg1[%c0, %c0_0] : memref<8x32xf32, #tpu.memory_space<vmem>>, vector<8x32xf32>
    %c0_1 = arith.constant 0 : index
    %c0_2 = arith.constant 0 : index
    %1 = vector.load %arg2[%c0_1, %c0_2] : memref<8x32xf32, #tpu.memory_space<vmem>>, vector<8x32xf32>
    %cst = arith.constant dense<0xFF800000> : vector<8xf32>
    %2 = vector.multi_reduction <maximumf>, %0, %cst [1] : vector<8x32xf32> to vector<8xf32>
    %3 = vector.shape_cast %2 : vector<8xf32> to vector<8x1xf32>
    %4 = vector.broadcast %3 : vector<8x1xf32> to vector<8x32xf32>
    %5 = arith.subf %0, %4 : vector<8x32xf32>
    %6 = math.exp %5 : vector<8x32xf32>
    %cst_3 = arith.constant dense<0.000000e+00> : vector<8xf32>
    %7 = vector.multi_reduction <add>, %6, %cst_3 [1] : vector<8x32xf32> to vector<8xf32>
    %8 = vector.shape_cast %7 : vector<8xf32> to vector<8x1xf32>
    %9 = math.log %8 : vector<8x1xf32>
    %cst_4 = arith.constant dense<0.000000e+00> : vector<8xf32>
    %10 = vector.multi_reduction <add>, %1, %cst_4 [1] : vector<8x32xf32> to vector<8xf32>
    %11 = vector.shape_cast %10 : vector<8xf32> to vector<8x1xf32>
    %12 = arith.mulf %1, %5 : vector<8x32xf32>
    %cst_5 = arith.constant dense<0.000000e+00> : vector<8xf32>
    %13 = vector.multi_reduction <add>, %12, %cst_5 [1] : vector<8x32xf32> to vector<8xf32>
    %14 = vector.shape_cast %13 : vector<8xf32> to vector<8x1xf32>
    %15 = arith.mulf %11, %9 : vector<8x1xf32>
    %16 = arith.subf %15, %14 : vector<8x1xf32>
    %cst_6 = arith.constant 0.000000e+00 : f32
    %17 = vector.broadcast %cst_6 : f32 to vector<1x8x128xf32>
    %18 = vector.shape_cast %16 : vector<8x1xf32> to vector<1x8x1xf32>
    %cst_7 = arith.constant dense<0.000000e+00> : vector<1xf32>
    %19 = vector.multi_reduction <add>, %18, %cst_7 [1, 2] : vector<1x8x1xf32> to vector<1xf32>
    %20 = vector.shape_cast %19 : vector<1xf32> to vector<1x1x1xf32>
    %21 = vector.extract %20[0, 0, 0] : f32 from vector<1x1x1xf32>
    %22 = vector.broadcast %21 : f32 to vector<1x8x128xf32>
    %23 = arith.addf %17, %22 : vector<1x8x128xf32>
    %c0_8 = arith.constant 0 : index
    %c0_9 = arith.constant 0 : index
    %c0_10 = arith.constant 0 : index
    %24 = vector.load %arg3[%c0_8, %c0_9, %c0_10] : memref<1x8x128xf32, #tpu.memory_space<vmem>>, vector<1x8x128xf32>
    tpu.vector_store %arg3[%c0_8, %c0_9, %c0_10], %23 {strides = array<i32>} : memref<1x8x128xf32, #tpu.memory_space<vmem>>, vector<1x8x128xf32>,
    return
  }
  func.func @transform_0(%arg0: i32) -> (i32, i32) {
    %c0_i32 = arith.constant 0 : i32
    %c0_i32_0 = arith.constant 0 : i32
    return %arg0, %c0_i32 : i32, i32
  }
  func.func @transform_1(%arg0: i32) -> (i32, i32) {
    %c0_i32 = arith.constant 0 : i32
    %c0_i32_0 = arith.constant 0 : i32
    return %arg0, %c0_i32 : i32, i32
  }
  func.func @transform_2(%arg0: i32) -> (i32, i32, i32) {
    %c0_i32 = arith.constant 0 : i32
    %c0_i32_0 = arith.constant 0 : i32
    %c0_i32_1 = arith.constant 0 : i32
    return %arg0, %c0_i32, %c0_i32_0 : i32, i32, i32
  }
}

</mosaic_0001>

<bundles_post_ra>
// kernel: tpu_custom_call.1
= control target key start
LH: loop header
LB: loop body
LE: loop exit
PB: predicated region body
PF: predicated region fallthrough
CT: control target
= control target key end

     0   :  { %7 = vsyncpa [#allocation3], 0  ;;  %s730_s0 = inlined_call_operand.hbm [shape: f32[16,32], index: 0, kind: input, shape index: {}]   ;;  %s731_s1 = inlined_call_operand.hbm [shape: f32[16,32], index: 1, kind: input, shape index: {}]   ;;  %s732_s2 = inlined_call_operand.hbm [shape: f32[2,8,128], index: 2, kind: output, shape index: {}]  }
   0x1   :  { %9 = vsyncpa [#allocation3 + $0x1], 0 }
   0x2   :  { %10 = vsyncpa [#allocation6], 0 }
   0x3   :  { %12 = vsyncpa [#allocation6 + $0x1], 0 }
   0x4   :  { %13 = vsyncpa [#allocation4], 0 }
   0x5   :  { %15 = vsyncpa [#allocation4 + $0x1], 0  ;;  %s565_s9 = smov 0   ;;  %s567_s10 = smov 0  }
   0x6   :  { %s569_s11 = smov 0   ;;  %s571_s12 = smov 0  }
   0x7 LB: > { %s586_s13 = sadd.s32 4294967295, %s548_s12   ;;  %s346_s14 = sadd.s32 4294967294, %s548_s12   ;;  %s548_s12 = sphi %s571_s12, %s743_s12   ;;  %s544_s11 = sphi %s569_s11, %s742_s11   ;;  %s540_s10 = sphi %s567_s10, %s741_s10   ;;  %s536_s9 = sphi %s565_s9, %s740_s9  }
   0x8   : > { %s590_s15 = sadd.s32 1, %s548_s12   ;;  %s28_s16 = sadd.s32 1, %s544_s11 }
   0x9   : > { %s25_s17 = ssub.s32 %s548_s12, %s590_s15  ;;  %p35_p0 = scmp.ne.s32.totalorder %s544_s11, %s540_s10 }
   0xa   : > { %p26_p1 = scmp.eq.s32.totalorder %s25_s17, 0  ;;  %p36_p2 = scmp.eq.s32.totalorder %s548_s12, 0 }
   0xb   : > { %p41_p3 = scmp.ne.s32.totalorder %s540_s10, %s536_s9  ;;  %p42_p4 = scmp.eq.s32.totalorder %s586_s13, 0 }
   0xc   : > { %s602_s18 = scalar_select %p26_p1, %s544_s11, %s28_s16  }
   0xd   : > { %p604_p5 = por %p36_p2, %p35_p0  ;;  %p608_p6 = por %p42_p4, %p41_p3 }
   0xe   : > { %p91_p7 = scmp.eq.s32.totalorder %s586_s13, 1  ;;  %p97_p8 = scmp.eq.s32.totalorder %s346_s14, 1 }
   0xf   : > { %p380_p10 = scmp.lt.s32.totalorder %s548_s12, 2  ;;  %s624_s23 = sand.u32 1, %s544_s11  }
  0x10   : > { %p615_p11 = por %p91_p7, %p35_p0  ;;  %p619_p12 = por %p97_p8, %p41_p3 }
  0x11   : > { %s350_s24 = sshll.u32 %s548_s12, 3  ;;  %s349_s25 = sshll.u32 %s624_s23, 3 }
  0x12   : > { %s125_s28 = scalar_lea.hbm %s730_s0, %s350_s24  ;;  %s121_s30 = scalar_lea.vmem [#allocation2], %s349_s25 }
  0x13   : > { %s127_s29 = sshll.u32 %s125_s28, 4  ;;  %s129_s3 = sshll.u32 %s121_s30, 4  ;;  %s128_s29 = int_to_ptr.hbm [resolvable:$true] %s127_s29  ;;  %s130_s3 = int_to_ptr.vmem [resolvable:$true] %s129_s3 }
  0x14   : > { %p633_p13 = pnand %p380_p10, %p604_p5  ;;  %p353_p0 = scmp.ge.s32.totalorder %s548_s12, 1 }
  0x15   : > { %p153_p1 = scmp.lt.s32.totalorder %s548_s12, 3  ;;  %s118_s5 = scalar_lea.sflag [#allocation3], %s624_s23 }
  0x16   : > { %s418_s6 = sshra.s32 %s128_s29, 4  ;;  %p422_p3 = pneg %p633_p13  ;;  %s419_s6 = int_to_ptr.hbm [resolvable:$true] %s418_s6 }
  0x17   : > { %s420_s7 = scalar_lea.hbm %s419_s6, 8  ;;  %s425_s16 = scalar_lea.hbm %s730_s0, 16 }
  0x18   : > { %p421_p2 = scmp.ne.s32.totalorder %s419_s6, %s420_s7  ;;  %p426_p5 = scmp.lt.s32.totalorder %s419_s6, %s730_s0 }
  0x19   : > { %p427_p8 = scmp.lt.s32.totalorder %s425_s16, %s420_s7 }
  0x1a   : > { %p423_p4 = pnand %p422_p3, %p421_p2 }
  0x1b   : > { %p428_p10 = por %p427_p8, %p426_p5 }
  0x1c   : > { %p424_p7 = pneg %p423_p4 }
  0x1e   : > { %p429_p9 = pnand %p428_p10, %p424_p7 }
  0x20   : > { %432 = shalt.err (!%p429_p9)
}
  0x21   : > { %372 = dma.hbm_to_vmem [thread:$0]  (!%p633_p13), %s128_s29, 128, %s130_s3, %s118_s5  }
  0x22   : > { %p657_p2 = pnand %p353_p0, %p153_p1  ;;  %s144_s30 = scalar_lea.hbm %s731_s1, %s350_s24 }
  0x23   : > { %s146_s6 = sshll.u32 %s144_s30, 4  ;;  %s140_s7 = scalar_lea.vmem [#allocation5], %s349_s25  ;;  %s147_s6 = int_to_ptr.hbm [resolvable:$true] %s146_s6 }
  0x24   : > { %s148_s8 = sshll.u32 %s140_s7, 4  ;;  %s137_s14 = scalar_lea.sflag [#allocation6], %s624_s23  ;;  %s149_s8 = int_to_ptr.vmem [resolvable:$true] %s148_s8 }
  0x25   : > { %s448_s16 = sshra.s32 %s147_s6, 4  ;;  %s455_s5 = scalar_lea.hbm %s731_s1, 16  ;;  %s449_s16 = int_to_ptr.hbm [resolvable:$true] %s448_s16 }
  0x26   : > { %s450_s17 = scalar_lea.hbm %s449_s16, 8  ;;  %p456_p4 = scmp.lt.s32.totalorder %s449_s16, %s731_s1 }
  0x27   : > { %p451_p9 = scmp.ne.s32.totalorder %s449_s16, %s450_s17  ;;  %p457_p7 = scmp.lt.s32.totalorder %s455_s5, %s450_s17 }
  0x29   : > { %p453_p0 = pnand %p451_p9, %p422_p3  ;;  %p458_p5 = por %p457_p7, %p456_p4 }
  0x2b   : > { %p454_p1 = pneg %p453_p0 }
  0x2d   : > { %p459_p8 = pnand %p458_p5, %p454_p1 }
  0x2f   : > { %462 = shalt.err (!%p459_p8)
}
  0x30   : > { %375 = dma.hbm_to_vmem [thread:$0]  (!%p633_p13), %s147_s6, 128, %s149_s8, %s137_s14  }
  0x31   : > { %157 = sbr.rel (%p657_p2) target bundleno = 499 (0x1f3), region = 28  ;;  %s679_s23 = sand.u32 (!%p657_p2), 1, %s540_s10  }
  0x32   : > { %s682_s25 = sshll.u32 (!%p657_p2), %s679_s23, 3  ;;  %s160_s27 = scalar_lea.sflag (!%p657_p2), [#allocation3], %s679_s23 }
  0x33   : > { %s163_s28 = scalar_lea.vmem (!%p657_p2), [#allocation2], %s682_s25 }
  0x36   : > { %523 = dma.done.wait (%p608_p6), %s160_s27, 128  }
  0x37   : > { %525 = vsyncadd (%p608_p6), %s160_s27, 4294967168  ;;  %s170_s4 = scalar_lea.sflag [#allocation6], %s679_s23  ;;  %s173_s26 = scalar_lea.vmem [#allocation5], %s682_s25 }
  0x38   : > { %527 = dma.done.wait (%p608_p6), %s170_s4, 128  }
  0x39   : > { %529 = vsyncadd (%p608_p6), %s170_s4, 4294967168  ;;  %vm202_vm0 = vcmask 261120   ;;  %v200_v0 = vld [vmem:[%s163_s28] sm:$0xff]  ;;  %v201_v1 = vld [vmem:[%s173_s26] sm:$0xff]  ;;  %vm223_vm1 = vcmask 7168   ;;  %s358_s20 = sshll.u32 %s586_s13, 3 }
  0x3a   : > { %v203_v2 = vsel %vm202_vm0, %v200_v0, -inf  ;;  %v214_v3 = vsel %vm202_vm0, %v201_v1, 0.0  ;;  %s248_s7 = scalar_lea.hbm %s732_s2, %s358_s20  ;;  %s199_s8 = scalar_lea.vmem [#allocation7], %s682_s25 }
  0x3b   : > { %204 = vmax.xlane.f32.xlu0 %v203_v2  ;;  %215 = vadd.xlane.f32.xlu1 %v214_v3  ;;  %s250_s14 = sshll.u32 %s199_s8, 4  ;;  %s252_s16 = sshll.u32 %s248_s7, 4  ;;  %s251_s14 = int_to_ptr.vmem [resolvable:$true] %s250_s14  ;;  %s253_s16 = int_to_ptr.hbm [resolvable:$true] %s252_s16 }
  0x3c   : > { %s238_s29 = scalar_lea.sflag [#allocation4], %s679_s23  ;;  %s492_s3 = sshra.s32 %s253_s16, 4  ;;  %s493_s3 = int_to_ptr.hbm [resolvable:$true] %s492_s3 }
  0x3d   : > { %s494_s5 = scalar_lea.hbm %s493_s3, 8  ;;  %s498_s24 = scalar_lea.hbm %s732_s2, 16 }
  0x3e   : > { %p495_p6 = scmp.ne.s32.totalorder %s493_s3, %s494_s5  ;;  %p499_p10 = scmp.lt.s32.totalorder %s493_s3, %s732_s2 }
  0x3f   : > { %p500_p2 = scmp.lt.s32.totalorder %s498_s24, %s494_s5 }
  0x40   : > { %p496_p13 = pnand %p495_p6, %p615_p11 }
  0x41   : > { %p501_p9 = por %p500_p2, %p499_p10 }
  0x42   : > { %p497_p3 = pneg %p496_p13 }
  0x44   : > { %p502_p0 = pnand %p501_p9, %p497_p3 }
  0xae   : > { %v205_v4 = vpop.xlane.xlu0 %204  ;;  %v216_v12 = vpop.xlane.xlu1 %215 }
  0xaf   : > { %v206_v5 = vsub.f32 %v200_v0, %v205_v4 }
  0xb1   : > { %v207_v6 = vmul.f32 1.442695, %v206_v5  ;;  %v217_v7 = vmul.f32 %v206_v5, %v201_v1 }
  0xb3   : > { %414 = vpow2.f32 %v207_v6  ;;  %v218_v8 = vsel %vm202_vm0, %v217_v7, 0.0 }
  0xb4   : > { %219 = vadd.xlane.f32.xlu1 %v218_v8 }
  0xb9   : > { %v415_v9 = vpop.eup %414 }
  0xba   : > { %v209_v10 = vsel %vm202_vm0, %v415_v9, 0.0 }
  0xbb   : > { %210 = vadd.xlane.f32.xlu0 %v209_v10 }
 0x127   : > { %v220_v16 = vpop.xlane.xlu1 %219 }
 0x12e   : > { %v211_v11 = vpop.xlane.xlu0 %210 }
 0x12f   : > { %416 = vlog2.f32 %v211_v11 }
 0x135   : > { %v417_v13 = vpop.eup %416 }
 0x136   : > { %v213_v14 = vmul.f32 0.6931472, %v417_v13 }
 0x138   : > { %v221_v15 = vmul.f32 %v216_v12, %v213_v14 }
 0x13a   : > { %v222_v17 = vsub.f32 %v221_v15, %v220_v16 }
 0x13c   : > { %v224_v18 = vsel %vm223_vm1, %v222_v17, 0.0 }
 0x13d   : > { %225 = vadd.xlane.f32.xlu2 %v224_v18 }
 0x1b0   : > { %v226_v19 = vpop.xlane.xlu2 %225 }
 0x1b1   : > { %v227_v20 = vrot.slane %v226_v19, 4 }
 0x1b3   : > { %v228_v21 = vadd.f32 %v227_v20, %v226_v19 }
 0x1b5   : > { %v229_v22 = vrot.slane %v228_v21, 2 }
 0x1b7   : > { %v230_v23 = vadd.f32 %v229_v22, %v228_v21 }
 0x1b9   : > { %v231_v24 = vrot.slane %v230_v23, 1 }
 0x1bb   : > { %v232_v25 = vadd.f32 %v231_v24, %v230_v23 }
 0x1bd   : > { %361 = vpush %v232_v25 }
 0x1ee   : > { %s362_s17 = spop %361 }
 0x1ef   : > { %v234_v26 = vstv %s362_s17 }
 0x1f0   : > { %236 = vst [vmem:[%s199_s8] sm:$0xff] %v234_v26 }
 0x1f1   : > { %505 = shalt.err (!%p502_p0)
}
 0x1f2   : > { %367 = dma.vmem_to_hbm [thread:$0]  (%p615_p11), %s251_s14, 128, %s253_s16, %s238_s29  }
 0x1f3 PF: > { %s264_s23 = sand.u32 1, %s536_s9   ;;  %p739_p1 = scmp.ge.s32.totalorder %s548_s12, 2 }
 0x1f4   : > { %s265_s28 = scalar_lea.sflag [#allocation4], %s264_s23 }
 0x1f5   : > { %p377_p4 = pnand %p739_p1, %p619_p12 }
 0x1f7   : > { %p378_p7 = pneg %p377_p4 }
 0x1f9   : > { %531 = dma.done.wait (%p378_p7), %s265_s28, 128  }
 0x1fa   : > { %533 = vsyncadd (%p378_p7), %s265_s28, 4294967168  ;;  %p18_p5 = scmp.ge.s32.totalorder %s590_s15, 4   ;;  %s740_s9 = smov %s540_s10 }
 0x1fb   : > { %s741_s10 = smov %s544_s11  ;;  %s742_s11 = smov %s602_s18 }
 0x1fc   : > { %s743_s12 = smov %s590_s15  ;;  %20 = sbr.rel (!%p18_p5) target bundleno = 7 (0x7), region = 86 }
 0x201   :  { %271 = vsyncpa [#allocation3], 1 }
 0x202   :  { %273 = vsyncpa [#allocation3 + $0x1], 1 }
 0x203   :  { %274 = vsyncpa [#allocation6], 1 }
 0x204   :  { %276 = vsyncpa [#allocation6 + $0x1], 1 }
 0x205   :  { %277 = vsyncpa [#allocation4], 1 }
 0x206   :  { %279 = vsyncpa [#allocation4 + $0x1], 1 }

</bundles_post_ra>
